<compile_context>
chip_gen: v7x
topology: tpu7x:2x2x1
jax: 0.10.0
libtpu: 0.0.40
codegen_flags: <defaults>
</compile_context>

<pallas_src>
import math

import jax
import jax.numpy as jnp
import numpy as np
from jax.experimental import pallas as pl
from jax.experimental.pallas import tpu as pltpu


def _make_differential_kernel(T, order, c_block):
    def kernel(x_ref, w_ref, b_ref, out_ref):
        # x_ref  : (1, c_block, T, N)      input dtype, native layout
        # w_ref  : (order, T, T)  f32      rows 0..i of w_ref[i] hold W_i shifted
        #                                  right by i columns (zeros elsewhere)
        # b_ref  : (order, T, 1)  f32      rows 0..i of b_ref[i] hold b_i
        # out_ref: (1, order+1, c_block, T, N)
        row = jax.lax.broadcasted_iota(jnp.int32, (T, 1), 0)   # sublane row index
        w_all = w_ref[...]
        b_all = b_ref[...]
        for c in range(c_block):                    # static unroll (c_block small)
            x0 = x_ref[0, c]                        # (T, N), input dtype
            out_ref[0, 0, c] = x0                   # order-0 copy, no casts
            # Shifted diff slab: y[r] holds diff^i(x0)[r - i] for r >= i.
            y = x0
            for i in range(order):                  # static unroll (order tiny)
                # Sigmoid rows 0..i: padded (T, T) LHS so the matmul operands are
                # identical to the reference (zero columns hit only the invalid
                # shifted rows of y) and no in-kernel weight slicing is needed.
                z = jnp.dot(w_all[i], y, preferred_element_type=jnp.float32)
                z = z + b_all[i]                    # (T, N), rows > i unused
                s = jax.nn.sigmoid(z)
                # Next diff order, still a full aligned (T, N) slab (exact VPU
                # subtraction, bit-matching the sequential reference).
                y = y - pltpu.roll(y, shift=1, axis=0)
                # One aligned full-tile store per order block.
                out_ref[0, i + 1, c] = jnp.where(row <= i, s, y).astype(out_ref.dtype)
    return kernel


def _choose_channel_block(B, C, T, N, order, itemsize,
                          vmem_budget=8 * 1024 * 1024, min_grid_steps=8):
    """Largest channel block (divisor of C) that keeps >= min_grid_steps grid
    steps and fits double-buffered in/out blocks plus in-kernel f32 temporaries
    in a conservative VMEM budget (well under the 16/32 MiB scoped defaults)."""
    per_c = 2 * (1 + (order + 1)) * T * N * itemsize   # double-buffered in + out
    per_c += 3 * T * N * 4                             # y, z, s f32 temporaries
    best = 1
    for cb in range(1, C + 1):
        if C % cb:
            continue
        if cb * per_c > vmem_budget:
            continue
        if B * (C // cb) >= min_grid_steps:
            best = cb
    return best


def pack_differential_params(weights, biases, T):
    """Hoisted (call once): zero-pad each Linear into a fixed (T, T) / (T, 1)
    slot aligned with the shifted diff layout used inside the kernel."""
    order = len(weights)
    w_all = jnp.zeros((order, T, T), jnp.float32)
    b_all = jnp.zeros((order, T, 1), jnp.float32)
    for i in range(order):
        w_all = w_all.at[i, : i + 1, i:].set(weights[i].astype(jnp.float32))
        b_all = b_all.at[i, : i + 1, 0].set(biases[i].astype(jnp.float32))
    return w_all, b_all


def differential_forward(x, w_all, b_all):
    """x: (B, C, T, N) -> (B, C*(order+1), T, N).  Matches Differential.forward
    (glu=False) with the packed params from pack_differential_params."""
    B, C, T, N = x.shape
    order = w_all.shape[0]
    itemsize = x.dtype.itemsize
    c_block = _choose_channel_block(B, C, T, N, order, itemsize)
    grid = (B, C // c_block)

    cost = pl.CostEstimate(
        flops=int(B * C * order * (2 * T * T * N + 2 * T * N)),
        transcendentals=int(B * C * order * T * N),
        bytes_accessed=int((order + 2) * B * C * T * N * itemsize
                           + 4 * (w_all.size + b_all.size)),
    )

    out5 = pl.pallas_call(
        _make_differential_kernel(T, order, c_block),
        out_shape=jax.ShapeDtypeStruct((B, order + 1, C, T, N), x.dtype),
        grid=grid,
        in_specs=[
            pl.BlockSpec((1, c_block, T, N), lambda b, c: (b, c, 0, 0)),
            pl.BlockSpec((order, T, T), lambda b, c: (0, 0, 0)),
            pl.BlockSpec((order, T, 1), lambda b, c: (0, 0, 0)),
        ],
        out_specs=pl.BlockSpec((1, order + 1, c_block, T, N),
                               lambda b, c: (b, 0, c, 0, 0)),
        compiler_params=pltpu.CompilerParams(
            dimension_semantics=("parallel", "parallel")),
        cost_estimate=cost,
    )(x, w_all, b_all)

    # (B, order+1, C, T, N) -> (B, (order+1)*C, T, N): adjacent-dim merge only
    # (no transpose, no copy), matching torch.cat(x_list, dim=1) ordering.
    return out5.reshape(B, (order + 1) * C, T, N)


def _reference_forward(x, weights, biases):
    """Pure-JAX reference mirroring the PyTorch forward (glu=False)."""
    x_list = [x]
    x0 = x
    for i in range(len(weights)):
        x1 = x0[:, :, 1:, :] - x0[:, :, :-1, :]
        x2 = jnp.einsum('bcnt,kt->bckn', jnp.swapaxes(x0, 2, 3), weights[i])
        x2 = x2 + biases[i][None, None, :, None]
        x_list.append(jnp.concatenate([jax.nn.sigmoid(x2), x1], axis=2))
        x0 = x1
    return jnp.concatenate(x_list, axis=1)


if __name__ == "__main__":
    B, C, T, N = 2, 4, 16, 16
    ORDER = 3

    key = jax.random.PRNGKey(0)
    kx, kparams = jax.random.split(key)
    x = jax.random.normal(kx, (B, C, T, N), jnp.float32)

    # Deterministic parameter init mimicking nn.Linear defaults:
    # W, b ~ U(-1/sqrt(fan_in), 1/sqrt(fan_in)); Linear(T - i, i + 1).
    weights, biases = [], []
    for i in range(ORDER):
        kparams, kw, kb = jax.random.split(kparams, 3)
        fan_in = T - i
        bound = 1.0 / math.sqrt(fan_in)
        weights.append(jax.random.uniform(
            kw, (i + 1, fan_in), jnp.float32, -bound, bound))
        biases.append(jax.random.uniform(
            kb, (i + 1,), jnp.float32, -bound, bound))

    # Packing hoisted out of the forward path (done once per model, not per call).
    w_all, b_all = pack_differential_params(weights, biases, T)

    fwd = jax.jit(differential_forward)
    out = jax.block_until_ready(fwd(x, w_all, b_all))
    ref = jax.block_until_ready(_reference_forward(x, weights, biases))

    assert out.shape == (B, C * (ORDER + 1), T, N), out.shape
    assert np.allclose(np.asarray(out), np.asarray(ref), atol=1e-5, rtol=1e-5)

    print("KERNEL_OK")
</pallas_src>

<mosaic_0001>
module attributes {stable_mosaic.version = 11 : i64} {
  func.func @kernel(%arg0: i32, %arg1: i32, %arg2: memref<1x1x16x16xf32, #tpu.memory_space<vmem>>, %arg3: memref<3x16x16xf32, #tpu.memory_space<vmem>>, %arg4: memref<3x16x1xf32, #tpu.memory_space<vmem>>, %arg5: memref<1x4x1x16x16xf32, #tpu.memory_space<vmem>>) attributes {dimension_semantics = [#tpu.dimension_semantics<parallel>, #tpu.dimension_semantics<parallel>], iteration_bounds = array<i64: 2, 4>, scalar_prefetch = 0 : i64, scratch_operands = 0 : i64, tpu.core_type = #tpu.core_type<tc>, window_params = [{transform_indices = @transform_0, window_bounds = array<i64: 1, 1, 16, 16>}, {pipeline_mode = #tpu.pipeline_mode<synchronous>, transform_indices = @transform_1, window_bounds = array<i64: 3, 16, 16>}, {pipeline_mode = #tpu.pipeline_mode<synchronous>, transform_indices = @transform_2, window_bounds = array<i64: 3, 16, 1>}, {transform_indices = @transform_3, window_bounds = array<i64: 1, 4, 1, 16, 16>}]} {
    %0 = tpu.iota {dimensions = array<i32: 0>} : vector<16x1xi32>
    %c0 = arith.constant 0 : index
    %c0_0 = arith.constant 0 : index
    %c0_1 = arith.constant 0 : index
    %1 = vector.load %arg3[%c0, %c0_0, %c0_1] : memref<3x16x16xf32, #tpu.memory_space<vmem>>, vector<3x16x16xf32>
    %c0_2 = arith.constant 0 : index
    %c0_3 = arith.constant 0 : index
    %c0_4 = arith.constant 0 : index
    %2 = vector.load %arg4[%c0_2, %c0_3, %c0_4] : memref<3x16x1xf32, #tpu.memory_space<vmem>>, vector<3x16x1xf32>
    %c0_5 = arith.constant 0 : index
    %c0_6 = arith.constant 0 : index
    %c0_7 = arith.constant 0 : index
    %c0_8 = arith.constant 0 : index
    %3 = vector.load %arg2[%c0_5, %c0_6, %c0_7, %c0_8] : memref<1x1x16x16xf32, #tpu.memory_space<vmem>>, vector<1x1x16x16xf32>
    %4 = vector.shape_cast %3 : vector<1x1x16x16xf32> to vector<16x16xf32>
    %c0_9 = arith.constant 0 : index
    %c0_10 = arith.constant 0 : index
    %c0_11 = arith.constant 0 : index
    %c0_12 = arith.constant 0 : index
    %c0_13 = arith.constant 0 : index
    %5 = vector.load %arg5[%c0_9, %c0_10, %c0_11, %c0_12, %c0_13] : memref<1x4x1x16x16xf32, #tpu.memory_space<vmem>>, vector<1x1x1x16x16xf32>
    %6 = vector.shape_cast %5 : vector<1x1x1x16x16xf32> to vector<16x16xf32>
    %7 = vector.shape_cast %4 : vector<16x16xf32> to vector<1x1x1x16x16xf32>
    tpu.vector_store %arg5[%c0_9, %c0_10, %c0_11, %c0_12, %c0_13], %7 {strides = array<i32>} : memref<1x4x1x16x16xf32, #tpu.memory_space<vmem>>, vector<1x1x1x16x16xf32>,
    %8 = vector.extract_strided_slice %1 {offsets = [0, 0, 0], sizes = [1, 16, 16], strides = [1, 1, 1]} : vector<3x16x16xf32> to vector<1x16x16xf32>
    %9 = vector.shape_cast %8 : vector<1x16x16xf32> to vector<16x16xf32>
    %cst = arith.constant dense<0.000000e+00> : vector<16x16xf32>
    %10 = tpu.matmul %9, %4, %cst {dimension_numbers = #tpu.dot_dimension_numbers<[1], [0], [0], [1], [0, 0, 1, 1], [], []>} : vector<16x16xf32>, vector<16x16xf32>, vector<16x16xf32> -> vector<16x16xf32>
    %11 = vector.extract_strided_slice %2 {offsets = [0, 0, 0], sizes = [1, 16, 1], strides = [1, 1, 1]} : vector<3x16x1xf32> to vector<1x16x1xf32>
    %12 = vector.shape_cast %11 : vector<1x16x1xf32> to vector<16x1xf32>
    %13 = vector.broadcast %12 : vector<16x1xf32> to vector<16x16xf32>
    %14 = arith.addf %10, %13 : vector<16x16xf32>
    %15 = arith.negf %14 : vector<16x16xf32>
    %16 = math.exp %15 : vector<16x16xf32>
    %cst_14 = arith.constant 1.000000e+00 : f32
    %17 = vector.broadcast %cst_14 : f32 to vector<16x16xf32>
    %18 = arith.addf %17, %16 : vector<16x16xf32>
    %19 = arith.divf %17, %18 : vector<16x16xf32>
    %c1_i32 = arith.constant 1 : i32
    %20 = tpu.dynamic_rotate %4 by %c1_i32 dim 0 : vector<16x16xf32>, i32 -> vector<16x16xf32>
    %21 = arith.subf %4, %20 : vector<16x16xf32>
    %c0_i32 = arith.constant 0 : i32
    %22 = vector.broadcast %c0_i32 : i32 to vector<16x1xi32>
    %23 = arith.cmpi sle, %0, %22 : vector<16x1xi32>
    %24 = vector.shape_cast %23 : vector<16x1xi1> to vector<16x1xi1>
    %25 = vector.broadcast %24 : vector<16x1xi1> to vector<16x16xi1>
    %26 = arith.select %25, %19, %21 : vector<16x16xi1>, vector<16x16xf32>
    %c0_15 = arith.constant 0 : index
    %c1 = arith.constant 1 : index
    %c0_16 = arith.constant 0 : index
    %c0_17 = arith.constant 0 : index
    %c0_18 = arith.constant 0 : index
    %27 = vector.load %arg5[%c0_15, %c1, %c0_16, %c0_17, %c0_18] : memref<1x4x1x16x16xf32, #tpu.memory_space<vmem>>, vector<1x1x1x16x16xf32>
    %28 = vector.shape_cast %27 : vector<1x1x1x16x16xf32> to vector<16x16xf32>
    %29 = vector.shape_cast %26 : vector<16x16xf32> to vector<1x1x1x16x16xf32>
    tpu.vector_store %arg5[%c0_15, %c1, %c0_16, %c0_17, %c0_18], %29 {strides = array<i32>} : memref<1x4x1x16x16xf32, #tpu.memory_space<vmem>>, vector<1x1x1x16x16xf32>,
    %30 = vector.extract_strided_slice %1 {offsets = [1, 0, 0], sizes = [1, 16, 16], strides = [1, 1, 1]} : vector<3x16x16xf32> to vector<1x16x16xf32>
    %31 = vector.shape_cast %30 : vector<1x16x16xf32> to vector<16x16xf32>
    %cst_19 = arith.constant dense<0.000000e+00> : vector<16x16xf32>
    %32 = tpu.matmul %31, %21, %cst_19 {dimension_numbers = #tpu.dot_dimension_numbers<[1], [0], [0], [1], [0, 0, 1, 1], [], []>} : vector<16x16xf32>, vector<16x16xf32>, vector<16x16xf32> -> vector<16x16xf32>
    %33 = vector.extract_strided_slice %2 {offsets = [1, 0, 0], sizes = [1, 16, 1], strides = [1, 1, 1]} : vector<3x16x1xf32> to vector<1x16x1xf32>
    %34 = vector.shape_cast %33 : vector<1x16x1xf32> to vector<16x1xf32>
    %35 = vector.broadcast %34 : vector<16x1xf32> to vector<16x16xf32>
    %36 = arith.addf %32, %35 : vector<16x16xf32>
    %37 = arith.negf %36 : vector<16x16xf32>
    %38 = math.exp %37 : vector<16x16xf32>
    %cst_20 = arith.constant 1.000000e+00 : f32
    %39 = vector.broadcast %cst_20 : f32 to vector<16x16xf32>
    %40 = arith.addf %39, %38 : vector<16x16xf32>
    %41 = arith.divf %39, %40 : vector<16x16xf32>
    %c1_i32_21 = arith.constant 1 : i32
    %42 = tpu.dynamic_rotate %21 by %c1_i32_21 dim 0 : vector<16x16xf32>, i32 -> vector<16x16xf32>
    %43 = arith.subf %21, %42 : vector<16x16xf32>
    %c1_i32_22 = arith.constant 1 : i32
    %44 = vector.broadcast %c1_i32_22 : i32 to vector<16x1xi32>
    %45 = arith.cmpi sle, %0, %44 : vector<16x1xi32>
    %46 = vector.shape_cast %45 : vector<16x1xi1> to vector<16x1xi1>
    %47 = vector.broadcast %46 : vector<16x1xi1> to vector<16x16xi1>
    %48 = arith.select %47, %41, %43 : vector<16x16xi1>, vector<16x16xf32>
    %c0_23 = arith.constant 0 : index
    %c2 = arith.constant 2 : index
    %c0_24 = arith.constant 0 : index
    %c0_25 = arith.constant 0 : index
    %c0_26 = arith.constant 0 : index
    %49 = vector.load %arg5[%c0_23, %c2, %c0_24, %c0_25, %c0_26] : memref<1x4x1x16x16xf32, #tpu.memory_space<vmem>>, vector<1x1x1x16x16xf32>
    %50 = vector.shape_cast %49 : vector<1x1x1x16x16xf32> to vector<16x16xf32>
    %51 = vector.shape_cast %48 : vector<16x16xf32> to vector<1x1x1x16x16xf32>
    tpu.vector_store %arg5[%c0_23, %c2, %c0_24, %c0_25, %c0_26], %51 {strides = array<i32>} : memref<1x4x1x16x16xf32, #tpu.memory_space<vmem>>, vector<1x1x1x16x16xf32>,
    %52 = vector.extract_strided_slice %1 {offsets = [2, 0, 0], sizes = [1, 16, 16], strides = [1, 1, 1]} : vector<3x16x16xf32> to vector<1x16x16xf32>
    %53 = vector.shape_cast %52 : vector<1x16x16xf32> to vector<16x16xf32>
    %cst_27 = arith.constant dense<0.000000e+00> : vector<16x16xf32>
    %54 = tpu.matmul %53, %43, %cst_27 {dimension_numbers = #tpu.dot_dimension_numbers<[1], [0], [0], [1], [0, 0, 1, 1], [], []>} : vector<16x16xf32>, vector<16x16xf32>, vector<16x16xf32> -> vector<16x16xf32>
    %55 = vector.extract_strided_slice %2 {offsets = [2, 0, 0], sizes = [1, 16, 1], strides = [1, 1, 1]} : vector<3x16x1xf32> to vector<1x16x1xf32>
    %56 = vector.shape_cast %55 : vector<1x16x1xf32> to vector<16x1xf32>
    %57 = vector.broadcast %56 : vector<16x1xf32> to vector<16x16xf32>
    %58 = arith.addf %54, %57 : vector<16x16xf32>
    %59 = arith.negf %58 : vector<16x16xf32>
    %60 = math.exp %59 : vector<16x16xf32>
    %cst_28 = arith.constant 1.000000e+00 : f32
    %61 = vector.broadcast %cst_28 : f32 to vector<16x16xf32>
    %62 = arith.addf %61, %60 : vector<16x16xf32>
    %63 = arith.divf %61, %62 : vector<16x16xf32>
    %c1_i32_29 = arith.constant 1 : i32
    %64 = tpu.dynamic_rotate %43 by %c1_i32_29 dim 0 : vector<16x16xf32>, i32 -> vector<16x16xf32>
    %65 = arith.subf %43, %64 : vector<16x16xf32>
    %c2_i32 = arith.constant 2 : i32
    %66 = vector.broadcast %c2_i32 : i32 to vector<16x1xi32>
    %67 = arith.cmpi sle, %0, %66 : vector<16x1xi32>
    %68 = vector.shape_cast %67 : vector<16x1xi1> to vector<16x1xi1>
    %69 = vector.broadcast %68 : vector<16x1xi1> to vector<16x16xi1>
    %70 = arith.select %69, %63, %65 : vector<16x16xi1>, vector<16x16xf32>
    %c0_30 = arith.constant 0 : index
    %c3 = arith.constant 3 : index
    %c0_31 = arith.constant 0 : index
    %c0_32 = arith.constant 0 : index
    %c0_33 = arith.constant 0 : index
    %71 = vector.load %arg5[%c0_30, %c3, %c0_31, %c0_32, %c0_33] : memref<1x4x1x16x16xf32, #tpu.memory_space<vmem>>, vector<1x1x1x16x16xf32>
    %72 = vector.shape_cast %71 : vector<1x1x1x16x16xf32> to vector<16x16xf32>
    %73 = vector.shape_cast %70 : vector<16x16xf32> to vector<1x1x1x16x16xf32>
    tpu.vector_store %arg5[%c0_30, %c3, %c0_31, %c0_32, %c0_33], %73 {strides = array<i32>} : memref<1x4x1x16x16xf32, #tpu.memory_space<vmem>>, vector<1x1x1x16x16xf32>,
    return
  }
  func.func @transform_0(%arg0: i32, %arg1: i32) -> (i32, i32, i32, i32) {
    %c0_i32 = arith.constant 0 : i32
    %c0_i32_0 = arith.constant 0 : i32
    %c0_i32_1 = arith.constant 0 : i32
    return %arg0, %arg1, %c0_i32, %c0_i32_0 : i32, i32, i32, i32
  }
  func.func @transform_1(%arg0: i32, %arg1: i32) -> (i32, i32, i32) {
    %c0_i32 = arith.constant 0 : i32
    %c0_i32_0 = arith.constant 0 : i32
    %c0_i32_1 = arith.constant 0 : i32
    %c0_i32_2 = arith.constant 0 : i32
    return %c0_i32, %c0_i32_0, %c0_i32_1 : i32, i32, i32
  }
  func.func @transform_2(%arg0: i32, %arg1: i32) -> (i32, i32, i32) {
    %c0_i32 = arith.constant 0 : i32
    %c0_i32_0 = arith.constant 0 : i32
    %c0_i32_1 = arith.constant 0 : i32
    %c0_i32_2 = arith.constant 0 : i32
    return %c0_i32, %c0_i32_0, %c0_i32_1 : i32, i32, i32
  }
  func.func @transform_3(%arg0: i32, %arg1: i32) -> (i32, i32, i32, i32, i32) {
    %c0_i32 = arith.constant 0 : i32
    %c0_i32_0 = arith.constant 0 : i32
    %c0_i32_1 = arith.constant 0 : i32
    %c0_i32_2 = arith.constant 0 : i32
    return %arg0, %c0_i32, %arg1, %c0_i32_0, %c0_i32_1 : i32, i32, i32, i32, i32
  }
}

</mosaic_0001>

<bundles_post_ra>
// kernel: differential_forward.1
= control target key start
LH: loop header
LB: loop body
LE: loop exit
PB: predicated region body
PF: predicated region fallthrough
CT: control target
= control target key end

     0   :  { %8 = vsyncpa [#allocation3], 0  ;;  %s1303_s0 = inlined_call_operand.hbm [shape: f32[2,4,16,16], index: 0, kind: input, shape index: {}]   ;;  %s1304_s1 = inlined_call_operand.vmem [shape: f32[3,16,16], index: 1, kind: input, shape index: {}]   ;;  %s1305_s2 = inlined_call_operand.vmem [shape: f32[3,16,1], index: 2, kind: input, shape index: {}]   ;;  %s1306_s3 = inlined_call_operand.hbm [shape: f32[2,4,4,16,16], index: 3, kind: output, shape index: {}]  }
   0x1   :  { %10 = vsyncpa [#allocation3 + $0x1], 0 }
   0x2   :  { %11 = vsyncpa [#allocation4], 0 }
   0x3   :  { %13 = vsyncpa [#allocation4 + $0x1], 0  ;;  %s1044_s12 = smov 0   ;;  %s1046_s13 = smov 0  }
   0x4   :  { %s1048_s14 = smov 0   ;;  %s1050_s15 = smov 0  }
   0x5   :  { %s1052_s16 = smov 0   ;;  %s1054_s17 = smov 0  }
   0x6   :  { %s1056_s18 = smov 0   ;;  %s1058_s19 = smov 0  }
   0x7 LB: > { %s723_s20 = sadd.s32 4294967295, %s1011_s19   ;;  %s724_s21 = sadd.s32 4294967294, %s1011_s19   ;;  %s1011_s19 = sphi %s1058_s19, %s19_s19   ;;  %s1007_s18 = sphi %s1056_s18, %s1324_s18   ;;  %s1003_s17 = sphi %s1054_s17, %s1323_s17   ;;  %s999_s16 = sphi %s1052_s16, %s1322_s16   ;;  %s995_s15 = sphi %s1050_s15, %s1321_s15   ;;  %s991_s14 = sphi %s1048_s14, %s1320_s14   ;;  %s987_s13 = sphi %s1046_s13, %s1319_s13   ;;  %s983_s12 = sphi %s1044_s12, %s1318_s12  }
   0x8   : > { %s28_s22 = sadd.s32 1, %s1003_s17  ;;  %s31_s23 = sadd.s32 1, %s1007_s18 }
   0x9   : > { %p29_p0 = scmp.ge.s32.totalorder %s28_s22, 4  ;;  %s40_s24 = sadd.s32 1, %s991_s14 }
   0xa   : > { %p47_p1 = scmp.ne.s32.totalorder %s991_s14, %s987_s13  ;;  %p48_p2 = scmp.eq.s32.totalorder %s1011_s19, 0 }
   0xb   : > { %s1326_s22 = smov (%p29_p0, %s28_s22), 0  ;;  %s1328_s23 = smov (!%p29_p0, %s31_s23), %s1007_s18 }
   0xc   : > { %s36_s25 = ssub.s32 %s1003_s17, %s1326_s22  ;;  %p1097_p3 = por %p48_p2, %p47_p1 }
   0xd   : > { %p33_p4 = scmp.ge.s32.totalorder %s1328_s23, 2  ;;  %p53_p5 = scmp.ne.s32.totalorder %s987_s13, %s983_s12 }
   0xe   : > { %p54_p6 = scmp.eq.s32.totalorder %s723_s20, 0  ;;  %p121_p7 = scmp.eq.s32.totalorder %s723_s20, 7 }
   0xf   : > { %s1330_s23 = smov (%p33_p4, %s1328_s23), 0  ;;  %p127_p10 = scmp.eq.s32.totalorder %s724_s21, 7 }
  0x10   : > { %1310 = sst [smem:[#allocation10_spill]] %s1330_s23  ;;  %p1105_p8 = por %p54_p6, %p53_p5 }
  0x11   : > { %p1109_p9 = por %p121_p7, %p47_p1  ;;  %s35_s29 = ssub.s32 %s1007_s18, %s1330_s23 }
  0x12   : > { %s37_s30 = sor.u32 %s36_s25, %s35_s29  ;;  %p1115_p12 = por %p127_p10, %p53_p5 }
  0x13   : > { %s1312_s28 = scalar_select %p1109_p9, 1, 0 }
  0x14   : > { %p38_p11 = scmp.eq.s32.totalorder %s37_s30, 0  ;;  %p821_p13 = scmp.lt.s32.totalorder %s1011_s19, 8 }
  0x15   : > { %s1313_s4 = scalar_select %p1115_p12, 1, 0 }
  0x16   : > { %s153_s5 = sand.u32 1, %s991_s14   ;;  %s728_s8 = sshll.u32 %s1003_s17, 1 }
  0x17   : > { %s1122_s6 = scalar_select %p38_p11, %s991_s14, %s40_s24  }
  0x18   : > { %s727_s7 = sshll.u32 %s153_s5, 4  ;;  %s729_s9 = sshll.u32 %s1007_s18, 3 }
  0x19   : > { %s157_s10 = scalar_lea.vmem [#allocation2], %s727_s7  ;;  %s163_s20 = sadd.s32 %s729_s9, %s728_s8 }
  0x1a   : > { %s166_s11 = sshll.u32 %s157_s10, 4  ;;  %s730_s23 = sshll.u32 %s163_s20, 7  ;;  %s1126_s11 = int_to_ptr.vmem [resolvable:$true] %s166_s11 }
  0x1b   : > { %p1130_p0 = pnand %p821_p13, %p1097_p3  ;;  %s1137_s24 = scalar_lea.hbm %s1303_s0, %s730_s23 }
  0x1c   : > { %s1139_s30 = scalar_lea.sflag [#allocation3], %s153_s5  ;;  %s911_s7 = scalar_lea.hbm %s1137_s24, 256 }
  0x1d   : > { %p912_p1 = scmp.ne.s32.totalorder %s1137_s24, %s911_s7  ;;  %p913_p2 = pneg %p1130_p0 }
  0x1e   : > { %s916_s9 = scalar_lea.hbm %s1303_s0, 2048  ;;  %p917_p5 = scmp.lt.u32.totalorder %s1137_s24, %s1303_s0 }
  0x1f   : > { %p914_p3 = pnand %p913_p2, %p912_p1  ;;  %p918_p6 = scmp.lt.u32.totalorder %s916_s9, %s911_s7 }
  0x20   : > { %p920_p10 = scmp.lt.u32.totalorder %s911_s7, %s1137_s24 }
  0x21   : > { %p915_p4 = pneg %p914_p3  ;;  %p919_p7 = por %p918_p6, %p917_p5 }
  0x23   : > { %p921_p11 = por %p920_p10, %p919_p7 }
  0x25   : > { %p922_p13 = pnand %p921_p11, %p915_p4 }
  0x27   : > { %925 = shalt.err (!%p922_p13)
}
  0x28   : > { %s926_s5 = scalar_lea.vmem %s1126_s11, 256  ;;  %s1013_s20 = smov [#allocation2]  }
  0x29   : > { %p927_p1 = scmp.ne.s32.totalorder %s1126_s11, %s926_s5  ;;  %s931_s25 = sshll.u32 %s1013_s20, 4  ;;  %s932_s25 = int_to_ptr.vmem [resolvable:$false] %s931_s25 }
  0x2a   : > { %s933_s29 = scalar_lea.vmem %s932_s25, 512  ;;  %p934_p9 = scmp.lt.s32.totalorder %s1126_s11, %s932_s25 }
  0x2b   : > { %p929_p3 = pnand %p927_p1, %p913_p2  ;;  %p935_p5 = scmp.lt.s32.totalorder %s933_s29, %s926_s5 }
  0x2d   : > { %p930_p12 = pneg %p929_p3  ;;  %p936_p6 = por %p935_p5, %p934_p9 }
  0x2f   : > { %p937_p7 = pnand %p936_p6, %p930_p12 }
  0x31   : > { %940 = shalt.err (!%p937_p7)
}
  0x32   : > { %s1014_s7 = smov 128   ;;  %s1015_s26 = smov 8  }
  0x33   : > { %816 = dma.hbm_to_vmem [thread:$0]  (!%p1130_p0), %s1137_s24, 256, %s1126_s11, %s1139_s30, %s1014_s7, %s1014_s7, %s1015_s26  }
  0x34   : > { %p731_p2 = scmp.ge.s32.totalorder %s1011_s19, 1  ;;  %p174_p4 = scmp.lt.s32.totalorder %s1011_s19, 9 }
  0x36   : > { %p175_p10 = pnand %p731_p2, %p174_p4 }
  0x37   : > { %s1170_s8 = sand.u32 (!%p175_p10), 1, %s987_s13  }
  0x38   : > { %178 = sbr.rel (%p175_p10) target bundleno = 338 (0x152), region = 32  ;;  %s732_s9 = sshll.u32 (!%p175_p10), %s1170_s8, 4 }
  0x39   : > { %s181_s23 = scalar_lea.sflag (!%p175_p10), [#allocation3], %s1170_s8  ;;  %s184_s10 = scalar_lea.vmem (!%p175_p10), [#allocation2], %s732_s9 }
  0x3f   : > { %974 = dma.done.wait (%p1105_p8), %s181_s23, 256  }
  0x40   : > { %976 = vsyncadd (%p1105_p8), %s181_s23, 4294967040  ;;  %v207_v0 = vlaneseq  ;;  %v1016_v1 = vmov 0   ;;  %s733_s11 = sshll.u32 %s1170_s8, 6  ;;  %vm224_vm0 = vcmask 130048   ;;  %v222_v3 = vld [vmem:[%s184_s10] sm:$0xff]  ;;  %v223_v4 = vld [vmem:[%s184_s10 + $0x8] sm:$0xff] }
  0x41   : > { %897 = vset.pattern.permute.xlu0 %v1016_v1  ;;  %898 = vset.pattern.permute.xlu1 %v1016_v1  ;;  %v210_v5 = vld [vmem:[%s1304_s1] sm:$0xff]  ;;  %s1185_s30 = scalar_lea.vmem [#allocation5], %s733_s11  ;;  %v791_v6 = vpack.c.bf16 %v223_v4, %v222_v3  ;;  %v330_v7 = vrot.slane %v222_v3, 7  ;;  %v331_v8 = vrot.slane %v223_v4, 7  ;;  %v212_v9 = vld [vmem:[%s1304_s1 + $0x10] sm:$0xff]  ;;  %v211_v16 = vld [vmem:[%s1304_s1 + $0x8] sm:$0xff] }
  0x42   : > { %v1178_v2 = vshrl.u32 %v207_v0, 7  ;;  %225 = vst.msk [vmem:[%s1185_s30] sm:$0xff] %vm224_vm0, %v222_v3  ;;  %226 = vst.msk [vmem:[%s1185_s30 + $0x8] sm:$0xff] %vm224_vm0, %v223_v4  ;;  %774 = vmatprep.mubr.msk.f32.mxu0 %vm224_vm0, %v210_v5  ;;  %781 = vmatprep.mubr.msk.f32.mxu1 %vm224_vm0, %v212_v9  ;;  %v216_v10 = vld [vmem:[%s1305_s2] sm:$0xff]  ;;  %v218_v17 = vld [vmem:[%s1305_s2 + $0x10] sm:$0xff]  ;;  %s589_s25 = scalar_lea.sflag [#allocation4], %s1170_s8 }
  0x43   : > { %792 = vmatprep.subr.bf16.mxu0 %v791_v6  ;;  %229 = vperm.xlu0 %897, %v216_v10   ;;  %v220_v13 = vld [vmem:[%s1305_s2 + $0x20] sm:$0xff]  ;;  %v213_v26 = vld [vmem:[%s1304_s1 + $0x18] sm:$0xff]  ;;  %v215_v33 = vld [vmem:[%s1304_s1 + $0x28] sm:$0xff] }
  0x44   : > { %vm332_vm1 = vcmp.lt.s32.totalorder %v1178_v2, 1  ;;  %794 = vmatpush3.bf16.msra.mxu0 %v791_v6  ;;  %470 = vperm.xlu1 %898, %v220_v13   ;;  %v214_v18 = vld [vmem:[%s1304_s1 + $0x20] sm:$0xff]  ;;  %vm337_vm2 = vcmp.le.s32.totalorder %v1178_v2, 0  ;;  %vm457_vm3 = vcmp.le.s32.totalorder %v1178_v2, 1  ;;  %vm577_vm4 = vcmp.le.s32.totalorder %v1178_v2, 2 }
  0x45   : > { %v333_v11 = vsel %vm332_vm1, %v330_v7, %v331_v8  ;;  %v334_v12 = vsel %vm332_vm1, %v331_v8, %v330_v7 }
  0x46   : > { %v1206_v14 = vsub.f32 %v222_v3, %v334_v12  ;;  %v336_v15 = vsub.f32 %v223_v4, %v333_v11 }
  0x47   : > { %775 = vmatmul.mubr.msk.f32.vlgmr.msra.gmra.mrb[0].mxu0 %vm224_vm0, %v211_v16  ;;  %350 = vperm.xlu0 %897, %v218_v17  }
  0x48   : > { %739 = vst.msk [vmem:[%s1185_s30 + $0x18] sm:$0xff] %vm224_vm0, %v336_v15  ;;  %v795_v19 = vpack.c.bf16 %v336_v15, %v1206_v14  ;;  %v451_v20 = vrot.slane %v1206_v14, 7  ;;  %v452_v21 = vrot.slane %v336_v15, 7  ;;  %788 = vmatprep.mubr.msk.f32.mxu0 %vm224_vm0, %v214_v18 }
  0x4a   : > { %796 = vmatprep.subr.bf16.mxu1 %v795_v19  ;;  %v453_v22 = vsel %vm332_vm1, %v451_v20, %v452_v21  ;;  %v454_v23 = vsel %vm332_vm1, %v452_v21, %v451_v20 }
  0x4b   : > { %798 = vmatpush3.bf16.msra.mxu1 %v795_v19  ;;  %v455_v24 = vsub.f32 %v1206_v14, %v454_v23  ;;  %v456_v25 = vsub.f32 %v336_v15, %v453_v22 }
  0x4d   : > { %745 = vst.msk [vmem:[%s1185_s30 + $0x28] sm:$0xff] %vm224_vm0, %v456_v25  ;;  %v799_v27 = vpack.c.bf16 %v456_v25, %v455_v24  ;;  %v571_v28 = vrot.slane %v455_v24, 7  ;;  %v572_v29 = vrot.slane %v456_v25, 7 }
  0x4e   : > { %782 = vmatmul.mubr.msk.f32.vlgmr.msra.gmra.mrb[0].mxu1 %vm224_vm0, %v213_v26 }
  0x4f   : > { %800 = vmatprep.subr.bf16.mxu0 %v799_v27  ;;  %v573_v30 = vsel %vm332_vm1, %v571_v28, %v572_v29  ;;  %v574_v31 = vsel %vm332_vm1, %v572_v29, %v571_v28 }
  0x50   : > { %v576_v32 = vsub.f32 %v456_v25, %v573_v30  ;;  %802 = vmatpush3.bf16.msra.mxu0 %v799_v27  ;;  %v575_v59 = vsub.f32 %v455_v24, %v574_v31 }
  0x52   : > { %751 = vst.msk [vmem:[%s1185_s30 + $0x38] sm:$0xff] %vm224_vm0, %v576_v32 }
  0x53   : > { %789 = vmatmul.mubr.msk.f32.vlgmr.msra.gmra.mrb[2].mxu0 %vm224_vm0, %v215_v33 }
  0xc2   : > { %v230_v34 = vpop.permute.xlu0 %229 }
  0xc3   : > { %v471_v44 = vpop.permute.xlu1 %470 }
  0xc6   : > { %v351_v39 = vpop.permute.xlu0 %350 }
 0x11a   : > { %v776_v35 = vpop.f32.mrb[0].mxu0 }
 0x11b   : > { %v309_v36 = vpop.f32.mrb[1].mxu0 }
 0x11c   : > { %v310_v37 = vadd.f32 %v309_v36, %v230_v34 }
 0x11e   : > { %v736_v38 = vmul.f32 -1.442695, %v310_v37 }
 0x120   : > { %899 = vpow2.f32 %v736_v38 }
 0x121   : > { %v783_v40 = vpop.f32.mrb[0].mxu1 }
 0x122   : > { %v430_v41 = vpop.f32.mrb[1].mxu1 }
 0x123   : > { %v431_v42 = vadd.f32 %v430_v41, %v351_v39 }
 0x125   : > { %v742_v43 = vmul.f32 -1.442695, %v431_v42 }
 0x126   : > { %v790_v45 = vpop.f32.mrb[2].mxu0 }
 0x127   : > { %901 = vpow2.f32 %v742_v43  ;;  %v550_v46 = vpop.f32.mrb[3].mxu0 }
 0x128   : > { %v551_v47 = vadd.f32 %v550_v46, %v471_v44 }
 0x12a   : > { %v748_v48 = vmul.f32 -1.442695, %v551_v47  ;;  %v900_v49 = vpop.eup %899 }
 0x12b   : > { %v324_v50 = vadd.f32 1.0, %v900_v49 }
 0x12c   : > { %903 = vpow2.f32 %v748_v48 }
 0x12d   : > { %905 = vrcp.f32 %v324_v50 }
 0x131   : > { %v902_v51 = vpop.eup %901 }
 0x132   : > { %v445_v52 = vadd.f32 1.0, %v902_v51 }
 0x134   : > { %907 = vrcp.f32 %v445_v52 }
 0x136   : > { %v904_v53 = vpop.eup %903 }
 0x137   : > { %v565_v54 = vadd.f32 1.0, %v904_v53  ;;  %v906_v55 = vpop.eup %905 }
 0x138   : > { %v343_v56 = vsel %vm337_vm2, %v906_v55, %v1206_v14 }
 0x139   : > { %909 = vrcp.f32 %v565_v54  ;;  %738 = vst.msk [vmem:[%s1185_s30 + $0x10] sm:$0xff] %vm224_vm0, %v343_v56 }
 0x13e   : > { %v908_v57 = vpop.eup %907 }
 0x13f   : > { %v463_v58 = vsel %vm457_vm3, %v908_v57, %v455_v24 }
 0x140   : > { %744 = vst.msk [vmem:[%s1185_s30 + $0x20] sm:$0xff] %vm224_vm0, %v463_v58 }
 0x143   : > { %v910_v60 = vpop.eup %909 }
 0x144   : > { %v583_v61 = vsel %vm577_vm4, %v910_v60, %v575_v59 }
 0x145   : > { %750 = vst.msk [vmem:[%s1185_s30 + $0x30] sm:$0xff] %vm224_vm0, %v583_v61 }
 0x146   : > { %s753_s29 = sshll.u32 %s995_s15, 1  ;;  %s754_s7 = sshll.u32 %s999_s16, 5 }
 0x147   : > { %s601_s26 = sadd.s32 %s754_s7, %s753_s29  ;;  %s620_s9 = sshll.u32 %s1185_s30, 4  ;;  %s621_s9 = int_to_ptr.vmem [resolvable:$true] %s620_s9 }
 0x148   : > { %s755_s23 = sshll.u32 %s601_s26, 7  ;;  %s1017_s21 = smov 256  }
 0x149   : > { %s603_s8 = scalar_lea.hbm %s1306_s3, %s755_s23  ;;  %p1315_p8 = scmp.ne.s32.totalorder %s1312_s28, 0 }
 0x14a   : > { %s1018_s24 = smov 1024   ;;  %s1019_s27 = smov 2  }
 0x14b   : > { %805 = sst [smem:[#allocation7]] (%p1315_p8), %s1017_s21  ;;  %s1020_s15 = smov 128  }
 0x14c   : > { %806 = sst [smem:[#allocation7 + $0x1]] (%p1315_p8), %s1018_s24  ;;  %s1021_s16 = smov 8  }
 0x14d   : > { %807 = sst [smem:[#allocation7 + $0x2]] (%p1315_p8), %s1019_s27  ;;  %s1022_s30 = smov [#allocation6]  }
 0x14e   : > { %808 = sst [smem:[#allocation7 + $0x3]] (%p1315_p8), %s1020_s15  ;;  %s1023_s5 = smov 0  }
 0x14f   : > { %809 = sst [smem:[#allocation7 + $0x4]] (%p1315_p8), %s1020_s15 }
 0x150   : > { %810 = sst [smem:[#allocation7 + $0x5]] (%p1315_p8), %s1021_s16 }
 0x151   : > { %811 = dma.general (%p1315_p8), %s621_s9, 1024, %s603_s8, %s589_s25, %s1022_s30, [#allocation7], %s1023_s5, 0  }
 0x152 PF: > { %p822_p9 = scmp.ge.s32.totalorder %s1011_s19, 2  ;;  %s648_s20 = sand.u32 1, %s983_s12  }
 0x153   : > { %p1316_p12 = scmp.ne.s32.totalorder %s1313_s4, 0  ;;  %s649_s29 = scalar_lea.sflag [#allocation4], %s648_s20 }
 0x155   : > { %p818_p0 = pnand %p822_p9, %p1316_p12 }
 0x157   : > { %978 = dma.done.wait (!%p818_p0), %s649_s29, 1024  }
 0x158   : > { %980 = vsyncadd (!%p818_p0), %s649_s29, 4294966272  ;;  %s19_s19 = sadd.s32 1, %s1011_s19   ;;  %s1317_s28 = sld [smem:[#allocation10_spill]] }
 0x159   : > { %p16_p11 = scmp.ge.s32.totalorder %s19_s19, 10   ;;  %s1318_s12 = smov %s987_s13 }
 0x15a   : > { %s1319_s13 = smov %s991_s14  ;;  %s1320_s14 = smov %s1122_s6 }
 0x15b   : > { %s1321_s15 = smov %s1003_s17  ;;  %s1322_s16 = smov %s1007_s18 }
 0x15c   : > { %s1323_s17 = smov %s1326_s22  ;;  %18 = sbr.rel (!%p16_p11) target bundleno = 7 (0x7), region = 85 }
 0x15e   : > { %s1324_s18 = smov %s1317_s28 }
 0x163   :  { %654 = vsyncpa [#allocation3], 1 }
 0x164   :  { %656 = vsyncpa [#allocation3 + $0x1], 1 }
 0x165   :  { %657 = vsyncpa [#allocation4], 1 }
 0x166   :  { %659 = vsyncpa [#allocation4 + $0x1], 1 }

</bundles_post_ra>
